<compile_context>
chip_gen: v5e
topology: v5e:2x2
jax: 0.10.0
libtpu: 0.0.40
codegen_flags: <defaults>
</compile_context>

<pallas_src>
import math
import jax
import jax.numpy as jnp
from jax.experimental import pallas as pl
from jax.experimental.pallas import tpu as pltpu


# ----------------------------------------------------------------------------
# Kernels: one (TM, TN) output tile of A @ B (+ bias); K is the reduction axis.
# ----------------------------------------------------------------------------
def _matmul_kernel(a_ref, b_ref, o_ref, acc_ref):
    k = pl.program_id(2)

    @pl.when(k == 0)
    def _init():
        acc_ref[...] = jnp.zeros_like(acc_ref)

    acc_ref[...] += jnp.dot(a_ref[...], b_ref[...],
                            preferred_element_type=jnp.float32)

    @pl.when(k == pl.num_programs(2) - 1)
    def _finalize():
        o_ref[...] = acc_ref[...].astype(o_ref.dtype)


def _matmul_bias_kernel(a_ref, b_ref, bias_ref, o_ref, acc_ref):
    k = pl.program_id(2)

    @pl.when(k == 0)
    def _init():
        acc_ref[...] = jnp.zeros_like(acc_ref)

    acc_ref[...] += jnp.dot(a_ref[...], b_ref[...],
                            preferred_element_type=jnp.float32)

    @pl.when(k == pl.num_programs(2) - 1)
    def _finalize():
        # bias_ref is (1, TN): broadcast over the TM row axis, added exactly once.
        o_ref[...] = (acc_ref[...] + bias_ref[...]).astype(o_ref.dtype)


# ----------------------------------------------------------------------------
# Helpers
# ----------------------------------------------------------------------------
_MIB = 1024 * 1024


def _round_up(x, m):
    return ((x + m - 1) // m) * m


def _pad2d(x, rows, cols):
    r, c = x.shape
    if r == rows and c == cols:
        return x
    return jnp.pad(x, ((0, rows - r), (0, cols - c)))


def _vmem_cap_bytes():
    """Generation-aware scoped-VMEM cap: ~75% of physical VMEM
    (≈96 MiB on v5e/v6e's 128 MiB, ≈48 MiB on v7x's 64 MiB), with a
    v7x-safe 48 MiB fallback if the hardware query is unavailable."""
    try:
        cap = int(0.75 * pltpu.get_tpu_info().vmem_capacity_bytes)
        return max(32 * _MIB, min(cap, 100 * _MIB))
    except Exception:
        return 48 * _MIB


def _divisor_opts(dim, candidates):
    opts = [c for c in candidates if c <= dim and dim % c == 0]
    return opts if opts else [dim]


def _tile_footprint(tm, tn, tk, in_bytes, out_bytes):
    # 2x double-buffered A/B input tiles + f32 accumulator
    # + 2x double-buffered output tile + bias tile.
    return (2 * (tm * tk + tk * tn) * in_bytes
            + tm * tn * 4
            + 2 * tm * tn * out_bytes
            + 2 * tn * 4)


def _pick_tiles(M, N, K, in_bytes, out_bytes, budget):
    """Largest tiles (tm first, then tk, then tn) whose double-buffered
    footprint fits the VMEM budget. Prefers an i-grid >= 2 (v7x megacore)
    as long as tm stays >= 256."""
    tm_opts = _divisor_opts(M, (1024, 512, 256, 128))
    multi = [c for c in tm_opts if M // c >= 2 and c >= 256]
    if multi:
        tm_opts = multi + [c for c in tm_opts if c not in multi]
    tk_opts = _divisor_opts(K, (2048, 1024, 512, 256, 128))
    tn_opts = _divisor_opts(N, (512, 256, 128))

    for tm in tm_opts:
        for tk in tk_opts:
            for tn in tn_opts:
                if _tile_footprint(tm, tn, tk, in_bytes, out_bytes) <= budget:
                    return tm, tn, tk
    # Smallest candidates (always 128-aligned) as a last resort.
    return tm_opts[-1], tn_opts[-1], tk_opts[-1]


def _tiled_matmul(a, b, bias2d, *, out_dtype):
    """a: [M, K], b: [K, N], bias2d: [1, N] f32 or None (all dims 128-aligned)."""
    M, K = a.shape
    K2, N = b.shape
    assert K == K2 and a.dtype == b.dtype

    in_bytes = jnp.dtype(a.dtype).itemsize
    out_bytes = jnp.dtype(out_dtype).itemsize

    vmem_cap = _vmem_cap_bytes()
    tm, tn, tk = _pick_tiles(M, N, K, in_bytes, out_bytes,
                             budget=int(0.6 * vmem_cap))

    grid = (M // tm, N // tn, K // tk)
    gi, gj, _ = grid

    # Truthful HBM traffic: A is re-streamed once per j tile, B once per i tile.
    cost = pl.CostEstimate(
        flops=2 * M * N * K,
        transcendentals=0,
        bytes_accessed=(gj * M * K * in_bytes
                        + gi * K * N * in_bytes
                        + M * N * out_bytes
                        + N * 4),
    )

    compiler_params = pltpu.CompilerParams(
        dimension_semantics=("parallel", "parallel", "arbitrary"),
        vmem_limit_bytes=vmem_cap,
    )

    a_spec = pl.BlockSpec((tm, tk), lambda i, j, k: (i, k))
    b_spec = pl.BlockSpec((tk, tn), lambda i, j, k: (k, j))
    o_spec = pl.BlockSpec((tm, tn), lambda i, j, k: (i, j))

    if bias2d is None:
        return pl.pallas_call(
            _matmul_kernel,
            out_shape=jax.ShapeDtypeStruct((M, N), out_dtype),
            grid=grid,
            in_specs=[a_spec, b_spec],
            out_specs=o_spec,
            scratch_shapes=[pltpu.VMEM((tm, tn), jnp.float32)],
            compiler_params=compiler_params,
            cost_estimate=cost,
        )(a, b)

    bias_spec = pl.BlockSpec((1, tn), lambda i, j, k: (0, j))
    return pl.pallas_call(
        _matmul_bias_kernel,
        out_shape=jax.ShapeDtypeStruct((M, N), out_dtype),
        grid=grid,
        in_specs=[a_spec, b_spec, bias_spec],
        out_specs=o_spec,
        scratch_shapes=[pltpu.VMEM((tm, tn), jnp.float32)],
        compiler_params=compiler_params,
        cost_estimate=cost,
    )(a, b, bias2d)


# ----------------------------------------------------------------------------
# GraphConv forward
# ----------------------------------------------------------------------------
def graph_conv(features, adj, weight, bias=None, *, compute_dtype=jnp.bfloat16):
    """GraphConv forward: adj @ (features @ weight) + bias.

    features: [N, Fin], adj: [N, N] dense, weight: [Fin, Fout], bias: [Fout] or None.
    compute_dtype controls the dtype of the dominant stage-2 operands
    (adjacency / support streams); accumulation is always f32 and the output is
    f32. A 0/1 adjacency is exact in bf16. Pass compute_dtype=jnp.float32 for a
    bit-tight f32 result.
    """
    # TODO(synk): torch.spmm's sparse input is handled as a dense matmul here.
    N, Fin = features.shape
    Fout = weight.shape[1]

    # Lane/sublane-aligned padded dims (zero padding -> exact result).
    Np = _round_up(N, 128)
    Fin_p = _round_up(Fin, 128)
    Fout_p = _round_up(Fout, 128)

    # Stage-1 operands stay f32 (small streams); support is emitted directly in
    # compute_dtype so it is rounded exactly once.
    feat_p = _pad2d(features.astype(jnp.float32), Np, Fin_p)
    w_p = _pad2d(weight.astype(jnp.float32), Fin_p, Fout_p)

    # Cast the big O(N^2) adjacency BEFORE padding (one fewer full-size pass).
    adj_p = _pad2d(adj.astype(compute_dtype), Np, Np)

    if bias is not None:
        bias_p = _pad2d(bias.reshape(1, Fout).astype(jnp.float32), 1, Fout_p)
    else:
        bias_p = None

    # Stage 1: support = X @ W (computed exactly once, bias-less kernel).
    support = _tiled_matmul(feat_p, w_p, None, out_dtype=compute_dtype)

    # Stage 2: out = adj @ support + bias (bias added only at K-finalize).
    out_p = _tiled_matmul(adj_p, support, bias_p, out_dtype=jnp.float32)

    # Slice padding back off.
    return out_p[:N, :Fout]


if __name__ == "__main__":
    # Small shapes consistent with the module: N nodes, in/out feature dims.
    N = 16
    in_features = 32
    out_features = 32

    key = jax.random.PRNGKey(0)
    k_feat, k_adj, k_w, k_b = jax.random.split(key, 4)

    # Deterministic parameter init mirroring reset_parameters():
    # uniform(-stdv, stdv) with stdv = 1/sqrt(out_features).
    stdv = 1.0 / math.sqrt(out_features)
    weight = jax.random.uniform(k_w, (in_features, out_features),
                                dtype=jnp.float32, minval=-stdv, maxval=stdv)
    bias = jax.random.uniform(k_b, (out_features,),
                              dtype=jnp.float32, minval=-stdv, maxval=stdv)

    # Example inputs (dense adjacency — torch.spmm output equals dense matmul).
    features = jax.random.normal(k_feat, (N, in_features), dtype=jnp.float32)
    adj_raw = jax.random.uniform(k_adj, (N, N), dtype=jnp.float32)
    adj = (adj_raw > 0.5).astype(jnp.float32)  # synthetic binary adjacency

    ref = adj @ (features @ weight) + bias

    # Default path: bf16 stage-2 operands, f32 accumulation / output.
    out_bf16 = jax.block_until_ready(graph_conv(features, adj, weight, bias))
    assert out_bf16.shape == (N, out_features)
    assert out_bf16.dtype == jnp.float32
    assert jnp.allclose(out_bf16, ref, atol=3e-2, rtol=3e-2)

    # Bit-tight f32 path.
    out_f32 = jax.block_until_ready(
        graph_conv(features, adj, weight, bias, compute_dtype=jnp.float32))
    assert out_f32.shape == (N, out_features)
    assert jnp.allclose(out_f32, ref, atol=1e-4, rtol=1e-4)

    print("KERNEL_OK")
</pallas_src>

<mosaic_0001>
module attributes {stable_mosaic.version = 11 : i64} {
  func.func @_matmul_kernel(%arg0: i32, %arg1: i32, %arg2: i32, %arg3: memref<128x128xf32, #tpu.memory_space<vmem>>, %arg4: memref<128x128xf32, #tpu.memory_space<vmem>>, %arg5: memref<128x128xbf16, #tpu.memory_space<vmem>>, %arg6: memref<128x128xf32, #tpu.memory_space<vmem>>) attributes {dimension_semantics = [#tpu.dimension_semantics<parallel>, #tpu.dimension_semantics<parallel>, #tpu.dimension_semantics<arbitrary>], iteration_bounds = array<i64: 1, 1, 1>, scalar_prefetch = 0 : i64, scratch_operands = 1 : i64, tpu.core_type = #tpu.core_type<tc>, window_params = [{transform_indices = @transform_0, window_bounds = array<i64: 128, 128>}, {transform_indices = @transform_1, window_bounds = array<i64: 128, 128>}, {transform_indices = @transform_2, window_bounds = array<i64: 128, 128>}]} {
    %c0_i32 = arith.constant 0 : i32
    %0 = arith.cmpi eq, %arg2, %c0_i32 : i32
    %1 = arith.extui %0 : i1 to i32
    %c0_i32_0 = arith.constant 0 : i32
    %2 = arith.cmpi ne, %1, %c0_i32_0 : i32
    scf.if %2 {
      %cst_10 = arith.constant 0.000000e+00 : f32
      %12 = vector.broadcast %cst_10 : f32 to vector<128x128xf32>
      %c0_11 = arith.constant 0 : index
      %c0_12 = arith.constant 0 : index
      %13 = vector.load %arg6[%c0_11, %c0_12] : memref<128x128xf32, #tpu.memory_space<vmem>>, vector<128x128xf32>
      tpu.vector_store %arg6[%c0_11, %c0_12], %12 {strides = array<i32>} : memref<128x128xf32, #tpu.memory_space<vmem>>, vector<128x128xf32>,
    } else {
    }
    %c0 = arith.constant 0 : index
    %c0_1 = arith.constant 0 : index
    %3 = vector.load %arg6[%c0, %c0_1] : memref<128x128xf32, #tpu.memory_space<vmem>>, vector<128x128xf32>
    %c0_2 = arith.constant 0 : index
    %c0_3 = arith.constant 0 : index
    %4 = vector.load %arg3[%c0_2, %c0_3] : memref<128x128xf32, #tpu.memory_space<vmem>>, vector<128x128xf32>
    %c0_4 = arith.constant 0 : index
    %c0_5 = arith.constant 0 : index
    %5 = vector.load %arg4[%c0_4, %c0_5] : memref<128x128xf32, #tpu.memory_space<vmem>>, vector<128x128xf32>
    %cst = arith.constant dense<0.000000e+00> : vector<128x128xf32>
    %6 = tpu.matmul %4, %5, %cst {dimension_numbers = #tpu.dot_dimension_numbers<[1], [0], [0], [1], [0, 0, 1, 1], [], []>} : vector<128x128xf32>, vector<128x128xf32>, vector<128x128xf32> -> vector<128x128xf32>
    %7 = arith.addf %3, %6 : vector<128x128xf32>
    %c0_6 = arith.constant 0 : index
    %c0_7 = arith.constant 0 : index
    %8 = vector.load %arg6[%c0_6, %c0_7] : memref<128x128xf32, #tpu.memory_space<vmem>>, vector<128x128xf32>
    tpu.vector_store %arg6[%c0_6, %c0_7], %7 {strides = array<i32>} : memref<128x128xf32, #tpu.memory_space<vmem>>, vector<128x128xf32>,
    %c0_i32_8 = arith.constant 0 : i32
    %9 = arith.cmpi eq, %arg2, %c0_i32_8 : i32
    %10 = arith.extui %9 : i1 to i32
    %c0_i32_9 = arith.constant 0 : i32
    %11 = arith.cmpi ne, %10, %c0_i32_9 : i32
    scf.if %11 {
      %c0_10 = arith.constant 0 : index
      %c0_11 = arith.constant 0 : index
      %12 = vector.load %arg6[%c0_10, %c0_11] : memref<128x128xf32, #tpu.memory_space<vmem>>, vector<128x128xf32>
      %13 = arith.truncf %12 : vector<128x128xf32> to vector<128x128xbf16>
      %c0_12 = arith.constant 0 : index
      %c0_13 = arith.constant 0 : index
      %14 = vector.load %arg5[%c0_12, %c0_13] : memref<128x128xbf16, #tpu.memory_space<vmem>>, vector<128x128xbf16>
      tpu.vector_store %arg5[%c0_12, %c0_13], %13 {strides = array<i32>} : memref<128x128xbf16, #tpu.memory_space<vmem>>, vector<128x128xbf16>,
    } else {
    }
    return
  }
  func.func @transform_0(%arg0: i32, %arg1: i32, %arg2: i32) -> (i32, i32) {
    %c0_i32 = arith.constant 0 : i32
    return %arg0, %arg2 : i32, i32
  }
  func.func @transform_1(%arg0: i32, %arg1: i32, %arg2: i32) -> (i32, i32) {
    %c0_i32 = arith.constant 0 : i32
    return %arg2, %arg1 : i32, i32
  }
  func.func @transform_2(%arg0: i32, %arg1: i32, %arg2: i32) -> (i32, i32) {
    %c0_i32 = arith.constant 0 : i32
    return %arg0, %arg1 : i32, i32
  }
}

</mosaic_0001>

<bundles_post_ra>
// kernel: tpu_custom_call.1
= control target key start
LH: loop header
LB: loop body
LE: loop exit
PB: predicated region body
PF: predicated region fallthrough
CT: control target
= control target key end

     0   :  { %7 = vsyncpa [#allocation4], 0  ;;  %s491_s0 = inlined_call_operand.hbm [shape: f32[128,128], index: 0, kind: input, shape index: {}]   ;;  %s492_s1 = inlined_call_operand.hbm [shape: f32[128,128], index: 1, kind: input, shape index: {}]   ;;  %s493_s2 = inlined_call_operand.hbm [shape: bf16[128,128], index: 2, kind: output, shape index: {}]  }
   0x1   :  { %8 = vsyncpa [#allocation7], 0 }
   0x2   :  { %9 = vsyncpa [#allocation5], 0  ;;  %s14_s11 = sshll.u32 %s491_s0, 4  ;;  %s460_s12 = smov [#allocation3]   ;;  %s15_s11 = int_to_ptr.hbm [resolvable:$true] %s14_s11 }
   0x3   :  { %s16_s13 = sshll.u32 %s460_s12, 4  ;;  %s27_s16 = sshll.u32 %s492_s1, 4  ;;  %s17_s13 = int_to_ptr.vmem [resolvable:$true] %s16_s13  ;;  %s28_s16 = int_to_ptr.hbm [resolvable:$true] %s27_s16 }
   0x4   :  { %s461_s17 = smov 128   ;;  %s462_s18 = smov 8  }
   0x5   :  { %22 = dma.hbm_to_vmem [thread:$0]  %s15_s11, 2048, %s17_s13, [#allocation4], %s461_s17, %s461_s17, %s462_s18  }
   0x6   :  { %s463_s19 = smov [#allocation6]  }
   0x7   :  { %s29_s20 = sshll.u32 %s463_s19, 4  ;;  %s30_s20 = int_to_ptr.vmem [resolvable:$true] %s29_s20 }
   0x8   :  { %35 = dma.hbm_to_vmem [thread:$0]  %s28_s16, 2048, %s30_s20, [#allocation7], %s461_s17, %s461_s17, %s462_s18  }
   0x9   :  { %454 = dma.done.wait [#allocation4], 2048  }
   0xa   :  { %455 = vsyncadd [#allocation4], 4294965248 }
   0xb   :  { %456 = dma.done.wait [#allocation7], 2048  }
   0xc   :  { %457 = vsyncadd [#allocation7], 4294965248  ;;  %v111_v0 = vld [vmem:[#allocation6 + $0x78] sm:$0xff]  ;;  %v110_v1 = vld [vmem:[#allocation6 + $0x70] sm:$0xff]  ;;  %s464_s0 = smov [#allocation8]   ;;  %s266_s23 = sshll.u32 %s493_s2, 4  ;;  %s267_s23 = int_to_ptr.hbm [resolvable:$true] %s266_s23 }
   0xd   :  { %112 = vmatpush.msra.mxu0 %v111_v0  ;;  %327 = vmatpush.msra.mxu1 %v111_v0  ;;  %v109_v2 = vld [vmem:[#allocation6 + $0x68] sm:$0xff]  ;;  %v108_v3 = vld [vmem:[#allocation6 + $0x60] sm:$0xff]  ;;  %v107_v4 = vld [vmem:[#allocation6 + $0x58] sm:$0xff]  ;;  %s264_s1 = sshll.u32 %s464_s0, 4  ;;  %s465_s24 = smov 64   ;;  %s265_s1 = int_to_ptr.vmem [resolvable:$true] %s264_s1 }
   0xe   :  { %328 = vmatpush.msra.mxu2 %v111_v0  ;;  %329 = vmatpush.msra.mxu3 %v111_v0  ;;  %v106_v5 = vld [vmem:[#allocation6 + $0x50] sm:$0xff]  ;;  %v105_v6 = vld [vmem:[#allocation6 + $0x48] sm:$0xff]  ;;  %v104_v7 = vld [vmem:[#allocation6 + $0x40] sm:$0xff]  ;;  %s466_s25 = smov 4  }
   0xf   :  { %113 = vmatpush.msra.mxu0 %v110_v1  ;;  %330 = vmatpush.msra.mxu1 %v110_v1  ;;  %v103_v8 = vld [vmem:[#allocation6 + $0x38] sm:$0xff]  ;;  %v102_v9 = vld [vmem:[#allocation6 + $0x30] sm:$0xff]  ;;  %v101_v10 = vld [vmem:[#allocation6 + $0x28] sm:$0xff] }
  0x10   :  { %331 = vmatpush.msra.mxu2 %v110_v1  ;;  %332 = vmatpush.msra.mxu3 %v110_v1  ;;  %v100_v11 = vld [vmem:[#allocation6 + $0x20] sm:$0xff]  ;;  %v99_v12 = vld [vmem:[#allocation6 + $0x18] sm:$0xff]  ;;  %v98_v13 = vld [vmem:[#allocation6 + $0x10] sm:$0xff] }
  0x11   :  { %114 = vmatpush.msra.mxu0 %v109_v2  ;;  %333 = vmatpush.msra.mxu1 %v109_v2  ;;  %v97_v14 = vld [vmem:[#allocation6 + $0x8] sm:$0xff]  ;;  %v96_v15 = vld [vmem:[#allocation6] sm:$0xff]  ;;  %v82_v24 = vld [vmem:[#allocation3 + $0x10] sm:$0xff] }
  0x12   :  { %334 = vmatpush.msra.mxu2 %v109_v2  ;;  %335 = vmatpush.msra.mxu3 %v109_v2  ;;  %v80_v16 = vld [vmem:[#allocation3] sm:$0xff]  ;;  %v81_v20 = vld [vmem:[#allocation3 + $0x8] sm:$0xff]  ;;  %v86_v25 = vld [vmem:[#allocation3 + $0x30] sm:$0xff] }
  0x13   :  { %115 = vmatpush.msra.mxu0 %v108_v3  ;;  %336 = vmatpush.msra.mxu1 %v108_v3  ;;  %v84_v17 = vld [vmem:[#allocation3 + $0x20] sm:$0xff]  ;;  %v85_v21 = vld [vmem:[#allocation3 + $0x28] sm:$0xff]  ;;  %v90_v26 = vld [vmem:[#allocation3 + $0x50] sm:$0xff] }
  0x14   :  { %337 = vmatpush.msra.mxu2 %v108_v3  ;;  %338 = vmatpush.msra.mxu3 %v108_v3  ;;  %v88_v18 = vld [vmem:[#allocation3 + $0x40] sm:$0xff]  ;;  %v89_v22 = vld [vmem:[#allocation3 + $0x48] sm:$0xff]  ;;  %v94_v27 = vld [vmem:[#allocation3 + $0x70] sm:$0xff] }
  0x15   :  { %116 = vmatpush.msra.mxu0 %v107_v4  ;;  %339 = vmatpush.msra.mxu1 %v107_v4  ;;  %v92_v19 = vld [vmem:[#allocation3 + $0x60] sm:$0xff]  ;;  %v93_v23 = vld [vmem:[#allocation3 + $0x68] sm:$0xff]  ;;  %v83_v28 = vld [vmem:[#allocation3 + $0x18] sm:$0xff] }
  0x16   :  { %340 = vmatpush.msra.mxu2 %v107_v4  ;;  %341 = vmatpush.msra.mxu3 %v107_v4  ;;  %v87_v29 = vld [vmem:[#allocation3 + $0x38] sm:$0xff] }
  0x17   :  { %117 = vmatpush.msra.mxu0 %v106_v5  ;;  %342 = vmatpush.msra.mxu1 %v106_v5  ;;  %v91_v30 = vld [vmem:[#allocation3 + $0x58] sm:$0xff] }
  0x18   :  { %343 = vmatpush.msra.mxu2 %v106_v5  ;;  %344 = vmatpush.msra.mxu3 %v106_v5  ;;  %v95_v31 = vld [vmem:[#allocation3 + $0x78] sm:$0xff] }
  0x19   :  { %118 = vmatpush.msra.mxu0 %v105_v6  ;;  %345 = vmatpush.msra.mxu1 %v105_v6 }
  0x1a   :  { %346 = vmatpush.msra.mxu2 %v105_v6  ;;  %347 = vmatpush.msra.mxu3 %v105_v6 }
  0x1b   :  { %119 = vmatpush.msra.mxu0 %v104_v7  ;;  %348 = vmatpush.msra.mxu1 %v104_v7 }
  0x1c   :  { %349 = vmatpush.msra.mxu2 %v104_v7  ;;  %350 = vmatpush.msra.mxu3 %v104_v7 }
  0x1d   :  { %120 = vmatpush.msra.mxu0 %v103_v8  ;;  %351 = vmatpush.msra.mxu1 %v103_v8 }
  0x1e   :  { %352 = vmatpush.msra.mxu2 %v103_v8  ;;  %353 = vmatpush.msra.mxu3 %v103_v8 }
  0x1f   :  { %121 = vmatpush.msra.mxu0 %v102_v9  ;;  %354 = vmatpush.msra.mxu1 %v102_v9 }
  0x20   :  { %355 = vmatpush.msra.mxu2 %v102_v9  ;;  %356 = vmatpush.msra.mxu3 %v102_v9 }
  0x21   :  { %122 = vmatpush.msra.mxu0 %v101_v10  ;;  %357 = vmatpush.msra.mxu1 %v101_v10 }
  0x22   :  { %358 = vmatpush.msra.mxu2 %v101_v10  ;;  %359 = vmatpush.msra.mxu3 %v101_v10 }
  0x23   :  { %123 = vmatpush.msra.mxu0 %v100_v11  ;;  %360 = vmatpush.msra.mxu1 %v100_v11 }
  0x24   :  { %361 = vmatpush.msra.mxu2 %v100_v11  ;;  %362 = vmatpush.msra.mxu3 %v100_v11 }
  0x25   :  { %124 = vmatpush.msra.mxu0 %v99_v12  ;;  %363 = vmatpush.msra.mxu1 %v99_v12 }
  0x26   :  { %364 = vmatpush.msra.mxu2 %v99_v12  ;;  %365 = vmatpush.msra.mxu3 %v99_v12 }
  0x27   :  { %125 = vmatpush.msra.mxu0 %v98_v13  ;;  %366 = vmatpush.msra.mxu1 %v98_v13 }
  0x28   :  { %367 = vmatpush.msra.mxu2 %v98_v13  ;;  %368 = vmatpush.msra.mxu3 %v98_v13 }
  0x29   :  { %126 = vmatpush.msra.mxu0 %v97_v14  ;;  %369 = vmatpush.msra.mxu1 %v97_v14 }
  0x2a   :  { %370 = vmatpush.msra.mxu2 %v97_v14  ;;  %371 = vmatpush.msra.mxu3 %v97_v14 }
  0x2b   :  { %127 = vmatpush.msra.mxu0 %v96_v15  ;;  %372 = vmatpush.msra.mxu1 %v96_v15 }
  0x2c   :  { %373 = vmatpush.msra.mxu2 %v96_v15  ;;  %374 = vmatpush.msra.mxu3 %v96_v15 }
  0x2d   :  { %128 = vmatmul.f32.vlgmr.msra.gmra.mxu0 %v80_v16  ;;  %140 = vmatmul.f32.vlgmr.msra.gmra.mxu1 %v84_v17 }
  0x2e   :  { %152 = vmatmul.f32.vlgmr.msra.gmra.mxu2 %v88_v18  ;;  %164 = vmatmul.f32.vlgmr.msra.gmra.mxu3 %v92_v19 }
  0x35   :  { %131 = vmatmul.f32.gmra.mxu0 %v81_v20  ;;  %143 = vmatmul.f32.gmra.mxu1 %v85_v21 }
  0x36   :  { %155 = vmatmul.f32.gmra.mxu2 %v89_v22  ;;  %167 = vmatmul.f32.gmra.mxu3 %v93_v23 }
  0x3d   :  { %134 = vmatmul.f32.gmra.mxu0 %v82_v24  ;;  %146 = vmatmul.f32.gmra.mxu1 %v86_v25 }
  0x3e   :  { %158 = vmatmul.f32.gmra.mxu2 %v90_v26  ;;  %170 = vmatmul.f32.gmra.mxu3 %v94_v27 }
  0x45   :  { %137 = vmatmul.f32.gmra.mxu0 %v83_v28  ;;  %149 = vmatmul.f32.gmra.mxu1 %v87_v29 }
  0x46   :  { %161 = vmatmul.f32.gmra.mxu2 %v91_v30  ;;  %173 = vmatmul.f32.gmra.mxu3 %v95_v31 }
  0xaa   :  { %v129_v32 = vpop.f32.mrf.mxu0  ;;  %v141_v33 = vpop.f32.mrf.mxu1 }
  0xb1   :  { %v153_v34 = vpop.f32.mrf.mxu2  ;;  %v165_v35 = vpop.f32.mrf.mxu3 }
  0xb2   :  { %v132_v36 = vpop.f32.mrf.mxu0  ;;  %v144_v37 = vpop.f32.mrf.mxu1 }
  0xb3   :  { %v283_v38 = vpack.c.bf16 %v132_v36, %v129_v32  ;;  %v293_v39 = vpack.c.bf16 %v144_v37, %v141_v33 }
  0xb5   :  { %284 = vst [vmem:[#allocation8] sm:$0xff] %v283_v38  }
  0xb6   :  { %321 = vst [vmem:[#allocation8 + $0x10] sm:$0xff] %v293_v39  }
  0xb9   :  { %v156_v40 = vpop.f32.mrf.mxu2  ;;  %v168_v41 = vpop.f32.mrf.mxu3 }
  0xba   :  { %v303_v42 = vpack.c.bf16 %v156_v40, %v153_v34  ;;  %v313_v43 = vpack.c.bf16 %v168_v41, %v165_v35  ;;  %v135_v44 = vpop.f32.mrf.mxu0  ;;  %v147_v45 = vpop.f32.mrf.mxu1 }
  0xbc   :  { %323 = vst [vmem:[#allocation8 + $0x20] sm:$0xff] %v303_v42  }
  0xbd   :  { %325 = vst [vmem:[#allocation8 + $0x30] sm:$0xff] %v313_v43  }
  0xc1   :  { %v159_v46 = vpop.f32.mrf.mxu2  ;;  %v171_v47 = vpop.f32.mrf.mxu3 }
  0xc2   :  { %v138_v48 = vpop.f32.mrf.mxu0  ;;  %v150_v49 = vpop.f32.mrf.mxu1 }
  0xc3   :  { %v288_v50 = vpack.c.bf16 %v138_v48, %v135_v44  ;;  %v298_v51 = vpack.c.bf16 %v150_v49, %v147_v45 }
  0xc5   :  { %320 = vst [vmem:[#allocation8 + $0x8] sm:$0xff] %v288_v50  }
  0xc6   :  { %322 = vst [vmem:[#allocation8 + $0x18] sm:$0xff] %v298_v51  }
  0xc9   :  { %v162_v52 = vpop.f32.mrf.mxu2  ;;  %v174_v53 = vpop.f32.mrf.mxu3 }
  0xca   :  { %v308_v54 = vpack.c.bf16 %v162_v52, %v159_v46  ;;  %v318_v55 = vpack.c.bf16 %v174_v53, %v171_v47 }
  0xcc   :  { %324 = vst [vmem:[#allocation8 + $0x28] sm:$0xff] %v308_v54  }
  0xcd   :  { %326 = vst [vmem:[#allocation8 + $0x38] sm:$0xff] %v318_v55  }
  0xce   :  { %272 = dma.vmem_to_hbm [thread:$0]  %s265_s1, 1024, %s267_s23, [#allocation5], %s465_s24, %s465_s24, %s466_s25  }
  0xcf   :  { %458 = dma.done.wait [#allocation5], 1024  }
  0xd0   :  { %459 = vsyncadd [#allocation5], 4294966272 }
  0xd1   :  { %277 = vsyncpa [#allocation4], 1 }
  0xd2   :  { %278 = vsyncpa [#allocation7], 1 }
  0xd3   :  { %279 = vsyncpa [#allocation5], 1 }

</bundles_post_ra>
